<compile_context>
chip_gen: v7x
topology: tpu7x:2x2x1
jax: 0.10.0
libtpu: 0.0.40
codegen_flags: <defaults>
</compile_context>

<pallas_src>
import functools

import jax
import jax.numpy as jnp
from jax.experimental import pallas as pl
from jax.experimental.pallas import tpu as pltpu


def style_vectorizer_kernel(x_ref, w_ref, b_ref, o_ref, *, depth, slope):
    """Fused MLP: depth x (matmul + bias + LeakyReLU) on one batch tile.

    x_ref: (TB, E)          VMEM tile of the input batch
    w_ref: (depth, E, E)    all layer weights (grid-invariant, resident in VMEM)
    b_ref: (depth, 1, E)    all layer biases
    o_ref: (TB, E)          output tile
    """
    h = x_ref[...].astype(jnp.float32)

    # Fully unrolled: `d` is static, so w_ref[d] / b_ref[d] are static views
    # (no per-iteration dynamic-slice address math, no loop overhead).
    for d in range(depth):
        w = w_ref[d].astype(jnp.float32)          # (E, E)
        b = b_ref[d].astype(jnp.float32)          # (1, E), broadcasts over rows
        y = jnp.dot(h, w, preferred_element_type=jnp.float32) + b
        h = jnp.where(y >= 0, y, slope * y)       # LeakyReLU(negative_slope)

    o_ref[...] = h.astype(o_ref.dtype)


def _round_up(x, m):
    return ((x + m - 1) // m) * m


def _default_batch_tile(batch):
    # Large tiles amortize per-step DMA/setup overhead and raise MXU M-dim
    # occupancy; keep >=2 grid steps when possible so both v7x TensorCores get
    # work.  Cap at 1024 rows: a 1024x32 f32 tile is 128 KiB, trivially inside
    # even v7x's 64 MiB VMEM when double-buffered.
    if batch <= 16:
        return _round_up(max(batch, 1), 8)
    if batch <= 2048:
        return _round_up(pl.cdiv(batch, 2), 8)
    return 1024


def style_vectorizer(x, w_stack, b_stack, *, slope, batch_tile=None):
    """x: (B, E); w_stack: (depth, E, E) [in, out]; b_stack: (depth, E)."""
    B, E = x.shape
    depth = w_stack.shape[0]

    if batch_tile is None:
        batch_tile = _default_batch_tile(B)

    # Pad ragged batches instead of asserting; slice the padding back off.
    B_pad = pl.cdiv(B, batch_tile) * batch_tile
    if B_pad != B:
        x = jnp.pad(x, ((0, B_pad - B), (0, 0)))

    b_stack2 = b_stack.reshape(depth, 1, E)

    kernel = functools.partial(style_vectorizer_kernel, depth=depth, slope=slope)

    itemsize = jnp.dtype(x.dtype).itemsize
    cost = pl.CostEstimate(
        flops=2 * B_pad * depth * E * E,
        transcendentals=0,
        bytes_accessed=(
            2 * B_pad * E * itemsize                                   # x + out
            + w_stack.size * jnp.dtype(w_stack.dtype).itemsize         # weights
            + b_stack.size * jnp.dtype(b_stack.dtype).itemsize         # biases
        ),
    )

    out = pl.pallas_call(
        kernel,
        out_shape=jax.ShapeDtypeStruct((B_pad, E), x.dtype),
        grid_spec=pltpu.PrefetchScalarGridSpec(
            num_scalar_prefetch=0,
            grid=(B_pad // batch_tile,),
            in_specs=[
                pl.BlockSpec((batch_tile, E), lambda i: (i, 0)),
                # Grid-invariant operands (same block every step).
                pl.BlockSpec((depth, E, E), lambda i: (0, 0, 0)),
                pl.BlockSpec((depth, 1, E), lambda i: (0, 0, 0)),
            ],
            out_specs=pl.BlockSpec((batch_tile, E), lambda i: (i, 0)),
        ),
        compiler_params=pltpu.CompilerParams(
            dimension_semantics=("parallel",),
        ),
        cost_estimate=cost,
    )(x, w_stack, b_stack2)

    if B_pad != B:
        out = out[:B]
    return out


def reference(x, w_stack, b_stack, slope):
    h = x.astype(jnp.float32)
    for d in range(w_stack.shape[0]):
        y = h @ w_stack[d].astype(jnp.float32) + b_stack[d].astype(jnp.float32)
        h = jnp.where(y >= 0, y, slope * y)
    return h.astype(x.dtype)


if __name__ == "__main__":
    # Module hyper-params (small, consistent with StyleVectorizer(emb, depth, p))
    emb = 32
    depth = 3
    p = 0.2          # LeakyReLU negative slope
    batch = 64       # -> batch_tile=32, grid=(2,): both v7x TCs get a step

    key = jax.random.PRNGKey(0)
    kx, kw, kb = jax.random.split(key, 3)

    x = jax.random.normal(kx, (batch, emb), dtype=jnp.float32)

    # Deterministic synthetic parameters. PyTorch Linear stores W as (out, in);
    # we generate directly in (in, out) layout so the kernel computes h @ W.
    w_stack = jax.random.normal(kw, (depth, emb, emb), dtype=jnp.float32) * 0.1
    b_stack = jax.random.normal(kb, (depth, emb), dtype=jnp.float32) * 0.01

    out = style_vectorizer(x, w_stack, b_stack, slope=p)
    out = jax.block_until_ready(out)

    ref = reference(x, w_stack, b_stack, p)
    assert out.shape == (batch, emb)
    assert jnp.allclose(out, ref, atol=1e-5, rtol=1e-5), "mismatch vs reference"

    print("KERNEL_OK")
</pallas_src>

<mosaic_0001>
module attributes {stable_mosaic.version = 11 : i64} {
  func.func @style_vectorizer_kernel(%arg0: i32, %arg1: memref<32x32xf32, #tpu.memory_space<vmem>>, %arg2: memref<3x32x32xf32, #tpu.memory_space<vmem>>, %arg3: memref<3x1x32xf32, #tpu.memory_space<vmem>>, %arg4: memref<32x32xf32, #tpu.memory_space<vmem>>) attributes {dimension_semantics = [#tpu.dimension_semantics<parallel>], iteration_bounds = array<i64: 2>, scalar_prefetch = 0 : i64, scratch_operands = 0 : i64, tpu.core_type = #tpu.core_type<tc>, window_params = [{transform_indices = @transform_0, window_bounds = array<i64: 32, 32>}, {pipeline_mode = #tpu.pipeline_mode<synchronous>, transform_indices = @transform_1, window_bounds = array<i64: 3, 32, 32>}, {pipeline_mode = #tpu.pipeline_mode<synchronous>, transform_indices = @transform_2, window_bounds = array<i64: 3, 1, 32>}, {transform_indices = @transform_3, window_bounds = array<i64: 32, 32>}]} {
    %c0 = arith.constant 0 : index
    %c0_0 = arith.constant 0 : index
    %0 = vector.load %arg1[%c0, %c0_0] : memref<32x32xf32, #tpu.memory_space<vmem>>, vector<32x32xf32>
    %c0_1 = arith.constant 0 : index
    %c0_2 = arith.constant 0 : index
    %c0_3 = arith.constant 0 : index
    %1 = vector.load %arg2[%c0_1, %c0_2, %c0_3] : memref<3x32x32xf32, #tpu.memory_space<vmem>>, vector<1x32x32xf32>
    %2 = vector.shape_cast %1 : vector<1x32x32xf32> to vector<32x32xf32>
    %c0_4 = arith.constant 0 : index
    %c0_5 = arith.constant 0 : index
    %c0_6 = arith.constant 0 : index
    %3 = vector.load %arg3[%c0_4, %c0_5, %c0_6] : memref<3x1x32xf32, #tpu.memory_space<vmem>>, vector<1x1x32xf32>
    %4 = vector.shape_cast %3 : vector<1x1x32xf32> to vector<1x32xf32>
    %cst = arith.constant dense<0.000000e+00> : vector<32x32xf32>
    %5 = tpu.matmul %0, %2, %cst {dimension_numbers = #tpu.dot_dimension_numbers<[1], [0], [0], [1], [0, 0, 1, 1], [], []>} : vector<32x32xf32>, vector<32x32xf32>, vector<32x32xf32> -> vector<32x32xf32>
    %6 = vector.broadcast %4 : vector<1x32xf32> to vector<32x32xf32>
    %7 = arith.addf %5, %6 : vector<32x32xf32>
    %cst_7 = arith.constant 0.000000e+00 : f32
    %8 = vector.broadcast %cst_7 : f32 to vector<32x32xf32>
    %9 = arith.cmpf oge, %7, %8 : vector<32x32xf32>
    %cst_8 = arith.constant 2.000000e-01 : f32
    %10 = vector.broadcast %cst_8 : f32 to vector<32x32xf32>
    %11 = arith.mulf %10, %7 : vector<32x32xf32>
    %12 = arith.select %9, %7, %11 : vector<32x32xi1>, vector<32x32xf32>
    %c1 = arith.constant 1 : index
    %c0_9 = arith.constant 0 : index
    %c0_10 = arith.constant 0 : index
    %13 = vector.load %arg2[%c1, %c0_9, %c0_10] : memref<3x32x32xf32, #tpu.memory_space<vmem>>, vector<1x32x32xf32>
    %14 = vector.shape_cast %13 : vector<1x32x32xf32> to vector<32x32xf32>
    %c1_11 = arith.constant 1 : index
    %c0_12 = arith.constant 0 : index
    %c0_13 = arith.constant 0 : index
    %15 = vector.load %arg3[%c1_11, %c0_12, %c0_13] : memref<3x1x32xf32, #tpu.memory_space<vmem>>, vector<1x1x32xf32>
    %16 = vector.shape_cast %15 : vector<1x1x32xf32> to vector<1x32xf32>
    %cst_14 = arith.constant dense<0.000000e+00> : vector<32x32xf32>
    %17 = tpu.matmul %12, %14, %cst_14 {dimension_numbers = #tpu.dot_dimension_numbers<[1], [0], [0], [1], [0, 0, 1, 1], [], []>} : vector<32x32xf32>, vector<32x32xf32>, vector<32x32xf32> -> vector<32x32xf32>
    %18 = vector.broadcast %16 : vector<1x32xf32> to vector<32x32xf32>
    %19 = arith.addf %17, %18 : vector<32x32xf32>
    %cst_15 = arith.constant 0.000000e+00 : f32
    %20 = vector.broadcast %cst_15 : f32 to vector<32x32xf32>
    %21 = arith.cmpf oge, %19, %20 : vector<32x32xf32>
    %cst_16 = arith.constant 2.000000e-01 : f32
    %22 = vector.broadcast %cst_16 : f32 to vector<32x32xf32>
    %23 = arith.mulf %22, %19 : vector<32x32xf32>
    %24 = arith.select %21, %19, %23 : vector<32x32xi1>, vector<32x32xf32>
    %c2 = arith.constant 2 : index
    %c0_17 = arith.constant 0 : index
    %c0_18 = arith.constant 0 : index
    %25 = vector.load %arg2[%c2, %c0_17, %c0_18] : memref<3x32x32xf32, #tpu.memory_space<vmem>>, vector<1x32x32xf32>
    %26 = vector.shape_cast %25 : vector<1x32x32xf32> to vector<32x32xf32>
    %c2_19 = arith.constant 2 : index
    %c0_20 = arith.constant 0 : index
    %c0_21 = arith.constant 0 : index
    %27 = vector.load %arg3[%c2_19, %c0_20, %c0_21] : memref<3x1x32xf32, #tpu.memory_space<vmem>>, vector<1x1x32xf32>
    %28 = vector.shape_cast %27 : vector<1x1x32xf32> to vector<1x32xf32>
    %cst_22 = arith.constant dense<0.000000e+00> : vector<32x32xf32>
    %29 = tpu.matmul %24, %26, %cst_22 {dimension_numbers = #tpu.dot_dimension_numbers<[1], [0], [0], [1], [0, 0, 1, 1], [], []>} : vector<32x32xf32>, vector<32x32xf32>, vector<32x32xf32> -> vector<32x32xf32>
    %30 = vector.broadcast %28 : vector<1x32xf32> to vector<32x32xf32>
    %31 = arith.addf %29, %30 : vector<32x32xf32>
    %cst_23 = arith.constant 0.000000e+00 : f32
    %32 = vector.broadcast %cst_23 : f32 to vector<32x32xf32>
    %33 = arith.cmpf oge, %31, %32 : vector<32x32xf32>
    %cst_24 = arith.constant 2.000000e-01 : f32
    %34 = vector.broadcast %cst_24 : f32 to vector<32x32xf32>
    %35 = arith.mulf %34, %31 : vector<32x32xf32>
    %36 = arith.select %33, %31, %35 : vector<32x32xi1>, vector<32x32xf32>
    %c0_25 = arith.constant 0 : index
    %c0_26 = arith.constant 0 : index
    %37 = vector.load %arg4[%c0_25, %c0_26] : memref<32x32xf32, #tpu.memory_space<vmem>>, vector<32x32xf32>
    tpu.vector_store %arg4[%c0_25, %c0_26], %36 {strides = array<i32>} : memref<32x32xf32, #tpu.memory_space<vmem>>, vector<32x32xf32>,
    return
  }
  func.func @transform_0(%arg0: i32) -> (i32, i32) {
    %c0_i32 = arith.constant 0 : i32
    %c0_i32_0 = arith.constant 0 : i32
    return %arg0, %c0_i32 : i32, i32
  }
  func.func @transform_1(%arg0: i32) -> (i32, i32, i32) {
    %c0_i32 = arith.constant 0 : i32
    %c0_i32_0 = arith.constant 0 : i32
    %c0_i32_1 = arith.constant 0 : i32
    %c0_i32_2 = arith.constant 0 : i32
    return %c0_i32, %c0_i32_0, %c0_i32_1 : i32, i32, i32
  }
  func.func @transform_2(%arg0: i32) -> (i32, i32, i32) {
    %c0_i32 = arith.constant 0 : i32
    %c0_i32_0 = arith.constant 0 : i32
    %c0_i32_1 = arith.constant 0 : i32
    %c0_i32_2 = arith.constant 0 : i32
    return %c0_i32, %c0_i32_0, %c0_i32_1 : i32, i32, i32
  }
  func.func @transform_3(%arg0: i32) -> (i32, i32) {
    %c0_i32 = arith.constant 0 : i32
    %c0_i32_0 = arith.constant 0 : i32
    return %arg0, %c0_i32 : i32, i32
  }
}

</mosaic_0001>

<bundles_post_ra>
// kernel: tpu_custom_call.1
= control target key start
LH: loop header
LB: loop body
LE: loop exit
PB: predicated region body
PF: predicated region fallthrough
CT: control target
= control target key end

     0   :  { %s769_s12 = smov 0   ;;  %s854_s0 = inlined_call_operand.vmem [shape: f32[64,32], index: 0, kind: input, shape index: {}]   ;;  %s855_s1 = inlined_call_operand.vmem [shape: f32[3,32,32], index: 1, kind: input, shape index: {}]   ;;  %s856_s2 = inlined_call_operand.vmem [shape: f32[3,1,32], index: 2, kind: input, shape index: {}]   ;;  %s857_s3 = inlined_call_operand.vmem [shape: f32[64,32], index: 3, kind: output, shape index: {}]  }
   0x1 LB: > { %s603_s13 = sadd.s32 4294967295, %s747_s12   ;;  %p607_p0 = scmp.ge.s32.totalorder %s747_s12, 1  ;;  %s747_s12 = sphi %s769_s12, %s13_s12  }
   0x2   : > { %p138_p1 = scmp.lt.s32.totalorder %s747_s12, 3 }
   0x4   : > { %p139_p2 = pnand %p607_p0, %p138_p1 }
   0x5   : > { %v178_v0 = vld [vmem:[%s855_s1] sm:$0xff] (!%p139_p2)  ;;  %v179_v1 = vld [vmem:[%s855_s1 + $0x8] sm:$0xff] (!%p139_p2)  ;;  %v180_v2 = vld [vmem:[%s855_s1 + $0x10] sm:$0xff] (!%p139_p2)  ;;  %s608_s20 = sshll.u32 (!%p139_p2), %s603_s13, 2  ;;  %vm189_vm0 = vcmask (!%p139_p2), 261120  }
   0x6   : > { %142 = sbr.rel (%p139_p2) target bundleno = 679 (0x2a7), region = 32  ;;  %v705_v3 = vpack.c.bf16 (!%p139_p2), %v179_v1, %v178_v0  ;;  %v181_v4 = vld [vmem:[%s855_s1 + $0x18] sm:$0xff] (!%p139_p2)  ;;  %p163_p3 = scmp.lt.s32.totalorder (!%p139_p2), %s608_s20, 7  ;;  %v617_v10 = vld [vmem:[%s855_s1 + $0x20] sm:$0xff] (!%p139_p2)  ;;  %v618_v11 = vld [vmem:[%s855_s1 + $0x28] sm:$0xff] (!%p139_p2) }
   0x7   : > { %v709_v5 = vpack.c.bf16 (!%p139_p2), %v181_v4, %v180_v2  ;;  %v713_v12 = vpack.c.bf16 (!%p139_p2), %v618_v11, %v617_v10  ;;  %v619_v13 = vld [vmem:[%s855_s1 + $0x30] sm:$0xff] (!%p139_p2)  ;;  %v620_v14 = vld [vmem:[%s855_s1 + $0x38] sm:$0xff] (!%p139_p2)  ;;  %v612_v16 = vld [vmem:[%s856_s2] ss:$0 sm:$0xff] (!%p139_p2) }
   0x8   : > { %706 = vmatprep.subr.bf16.mxu0 (!%p139_p2), %v705_v3  ;;  %v717_v15 = vpack.c.bf16 (!%p139_p2), %v620_v14, %v619_v13  ;;  %v627_v33 = vld [vmem:[%s855_s1 + $0x40] sm:$0xff] (!%p139_p2)  ;;  %v628_v34 = vld [vmem:[%s855_s1 + $0x48] sm:$0xff] (!%p139_p2)  ;;  %v629_v36 = vld [vmem:[%s855_s1 + $0x50] sm:$0xff] (!%p139_p2) }
   0x9   : > { %708 = vmatpush3.bf16.msra.mxu0 (!%p139_p2), %v705_v3  ;;  %714 = vmatprep.subr.bf16.mxu1 (!%p139_p2), %v713_v12  ;;  %v721_v35 = vpack.c.bf16 (!%p139_p2), %v628_v34, %v627_v33  ;;  %v630_v37 = vld [vmem:[%s855_s1 + $0x58] sm:$0xff] (!%p139_p2)  ;;  %v622_v39 = vld [vmem:[%s856_s2 + $0x1] ss:$0 sm:$0xff] (!%p139_p2)  ;;  %v632_v56 = vld [vmem:[%s856_s2 + $0x2] ss:$0 sm:$0xff] (!%p139_p2) }
   0xa   : > { %710 = vmatprep.subr.bf16.mxu0 (!%p139_p2), %v709_v5  ;;  %716 = vmatpush3.bf16.msra.mxu1 (!%p139_p2), %v713_v12  ;;  %v725_v38 = vpack.c.bf16 (!%p139_p2), %v630_v37, %v629_v36 }
   0xb   : > { %718 = vmatprep.subr.bf16.mxu1 (!%p139_p2), %v717_v15 }
   0xd   : > { %s859_s20 = smov (!%p163_p3, %s608_s20), 7  ;;  %712 = vmatpush3.bf16.msra.mxu0 %v709_v5 }
   0xe   : > { %s609_s23 = sshll.u32 %s859_s20, 3  ;;  %720 = vmatpush3.bf16.msra.mxu1 %v717_v15  ;;  %722 = vmatprep.subr.bf16.mxu0 %v721_v35 }
   0xf   : > { %s166_s26 = scalar_lea.vmem %s854_s0, %s609_s23  ;;  %729 = vmatprep.subr.bf16.mxu1 %v721_v35  ;;  %s172_s27 = scalar_lea.vmem %s857_s3, %s609_s23 }
  0x10   : > { %v174_v6 = vld [vmem:[%s166_s26] sm:$0xff]  ;;  %v175_v7 = vld [vmem:[%s166_s26 + $0x8] sm:$0xff]  ;;  %v176_v8 = vld [vmem:[%s166_s26 + $0x10] sm:$0xff] }
  0x11   : > { %671 = vmatprep.mubr.msk.f32.mxu0 %vm189_vm0, %v174_v6  ;;  %v177_v9 = vld [vmem:[%s166_s26 + $0x18] sm:$0xff] }
  0x12   : > { %672 = vmatmul.mubr.msk.f32.vlgmr.msra.gmra.mrb[0].mxu0 %vm189_vm0, %v175_v7 }
  0x13   : > { %674 = vmatprep.mubr.msk.f32.mxu0 %vm189_vm0, %v176_v8  ;;  %724 = vmatpush3.bf16.msra.mxu0 %v721_v35 }
  0x14   : > { %726 = vmatprep.subr.bf16.mxu0 %v725_v38 }
  0x16   : > { %675 = vmatmul.mubr.msk.f32.gmra.mrb[2].mxu0 %vm189_vm0, %v177_v9 }
  0x17   : > { %728 = vmatpush3.bf16.msra.mxu0 %v725_v38 }
  0xe5   : > { %v673_v17 = vpop.f32.mrb[0].mxu0 }
  0xe6   : > { %v274_v18 = vadd.f32 %v673_v17, %v612_v16  ;;  %v268_v19 = vpop.f32.mrb[1].mxu0 }
  0xe7   : > { %v269_v20 = vadd.f32 %v612_v16, %v268_v19 }
  0xe8   : > { %v292_v21 = vmul.f32 0.2, %v274_v18  ;;  %vm288_vm1 = vcmp.ge.f32.partialorder %v274_v18, 0.0 }
  0xe9   : > { %v676_v22 = vpop.f32.mrb[2].mxu0  ;;  %vm287_vm2 = vcmp.ge.f32.partialorder %v269_v20, 0.0  ;;  %v291_v23 = vmul.f32 0.2, %v269_v20 }
  0xea   : > { %v284_v24 = vadd.f32 %v676_v22, %v612_v16  ;;  %v278_v25 = vpop.f32.mrb[3].mxu0  ;;  %v296_v29 = vsel %vm288_vm1, %v274_v18, %v292_v21 }
  0xeb   : > { %v279_v26 = vadd.f32 %v612_v16, %v278_v25  ;;  %v295_v27 = vsel %vm287_vm2, %v269_v20, %v291_v23 }
  0xec   : > { %v294_v28 = vmul.f32 0.2, %v284_v24  ;;  %685 = vmatprep.mubr.msk.f32.mxu1 %vm189_vm0, %v295_v27  ;;  %vm290_vm3 = vcmp.ge.f32.partialorder %v284_v24, 0.0 }
  0xed   : > { %vm289_vm4 = vcmp.ge.f32.partialorder %v279_v26, 0.0  ;;  %v293_v30 = vmul.f32 0.2, %v279_v26  ;;  %686 = vmatmul.mubr.msk.f32.vlgmr.msra.gmra.mrb[0].mxu1 %vm189_vm0, %v296_v29 }
  0xee   : > { %v298_v32 = vsel %vm290_vm3, %v284_v24, %v294_v28  ;;  %731 = vmatpush3.bf16.msra.mxu1 %v721_v35 }
  0xef   : > { %v297_v31 = vsel %vm289_vm4, %v279_v26, %v293_v30  ;;  %730 = vmatprep.subr.bf16.mxu1 %v725_v38 }
  0xf0   : > { %688 = vmatprep.mubr.msk.f32.mxu1 %vm189_vm0, %v297_v31 }
  0xf1   : > { %689 = vmatmul.mubr.msk.f32.gmra.mrb[2].mxu1 %vm189_vm0, %v298_v32 }
  0xf2   : > { %732 = vmatpush3.bf16.msra.mxu1 %v725_v38 }
 0x1c0   : > { %v687_v40 = vpop.f32.mrb[0].mxu1 }
 0x1c1   : > { %v396_v41 = vadd.f32 %v687_v40, %v622_v39  ;;  %v390_v42 = vpop.f32.mrb[1].mxu1 }
 0x1c2   : > { %v391_v43 = vadd.f32 %v622_v39, %v390_v42 }
 0x1c3   : > { %v414_v44 = vmul.f32 0.2, %v396_v41  ;;  %vm410_vm5 = vcmp.ge.f32.partialorder %v396_v41, 0.0 }
 0x1c4   : > { %vm409_vm6 = vcmp.ge.f32.partialorder %v391_v43, 0.0  ;;  %v413_v45 = vmul.f32 0.2, %v391_v43  ;;  %v690_v46 = vpop.f32.mrb[2].mxu1 }
 0x1c5   : > { %v406_v47 = vadd.f32 %v690_v46, %v622_v39  ;;  %v400_v48 = vpop.f32.mrb[3].mxu1  ;;  %v418_v51 = vsel %vm410_vm5, %v396_v41, %v414_v44 }
 0x1c6   : > { %v401_v49 = vadd.f32 %v622_v39, %v400_v48  ;;  %v417_v50 = vsel %vm409_vm6, %v391_v43, %v413_v45 }
 0x1c7   : > { %v416_v52 = vmul.f32 0.2, %v406_v47  ;;  %699 = vmatprep.mubr.msk.f32.mxu0 %vm189_vm0, %v417_v50  ;;  %vm412_vm7 = vcmp.ge.f32.partialorder %v406_v47, 0.0 }
 0x1c8   : > { %vm411_vm8 = vcmp.ge.f32.partialorder %v401_v49, 0.0  ;;  %v415_v53 = vmul.f32 0.2, %v401_v49  ;;  %700 = vmatmul.mubr.msk.f32.vlgmr.msra.gmra.mrb[4].mxu0 %vm189_vm0, %v418_v51 }
 0x1c9   : > { %v420_v55 = vsel %vm412_vm7, %v406_v47, %v416_v52 }
 0x1ca   : > { %v419_v54 = vsel %vm411_vm8, %v401_v49, %v415_v53 }
 0x1cb   : > { %702 = vmatprep.mubr.msk.f32.mxu1 %vm189_vm0, %v419_v54 }
 0x1cc   : > { %703 = vmatmul.mubr.msk.f32.vlgmr.msra.gmra.mrb[4].mxu1 %vm189_vm0, %v420_v55 }
 0x29b   : > { %v701_v57 = vpop.f32.mrb[4].mxu0 }
 0x29c   : > { %v518_v58 = vadd.f32 %v701_v57, %v632_v56  ;;  %v512_v59 = vpop.f32.mrb[5].mxu0 }
 0x29d   : > { %v513_v60 = vadd.f32 %v632_v56, %v512_v59 }
 0x29e   : > { %v536_v61 = vmul.f32 0.2, %v518_v58  ;;  %vm532_vm9 = vcmp.ge.f32.partialorder %v518_v58, 0.0 }
 0x29f   : > { %vm531_vm10 = vcmp.ge.f32.partialorder %v513_v60, 0.0  ;;  %v535_v62 = vmul.f32 0.2, %v513_v60  ;;  %v704_v63 = vpop.f32.mrb[4].mxu1 }
 0x2a0   : > { %v528_v0 = vadd.f32 %v704_v63, %v632_v56  ;;  %v522_v1 = vpop.f32.mrb[5].mxu1  ;;  %v540_v4 = vsel %vm532_vm9, %v518_v58, %v536_v61 }
 0x2a1   : > { %v539_v2 = vsel %vm531_vm10, %v513_v60, %v535_v62  ;;  %v523_v3 = vadd.f32 %v632_v56, %v522_v1  ;;  %544 = vst.msk [vmem:[%s172_s27 + $0x8] sm:$0xff] %vm189_vm0, %v540_v4 }
 0x2a2   : > { %543 = vst.msk [vmem:[%s172_s27] sm:$0xff] %vm189_vm0, %v539_v2  ;;  %v538_v5 = vmul.f32 0.2, %v528_v0  ;;  %vm534_vm11 = vcmp.ge.f32.partialorder %v528_v0, 0.0 }
 0x2a3   : > { %vm533_vm12 = vcmp.ge.f32.partialorder %v523_v3, 0.0  ;;  %v537_v6 = vmul.f32 0.2, %v523_v3 }
 0x2a4   : > { %v542_v8 = vsel %vm534_vm11, %v528_v0, %v538_v5 }
 0x2a5   : > { %v541_v7 = vsel %vm533_vm12, %v523_v3, %v537_v6  ;;  %546 = vst.msk [vmem:[%s172_s27 + $0x18] sm:$0xff] %vm189_vm0, %v542_v8 }
 0x2a6   : > { %545 = vst.msk [vmem:[%s172_s27 + $0x10] sm:$0xff] %vm189_vm0, %v541_v7 }
 0x2a7 PF: > { %s13_s12 = sadd.s32 1, %s747_s12  }
 0x2a8   : > { %p10_p4 = scmp.ge.s32.totalorder %s13_s12, 4  }
 0x2aa   :  { %12 = sbr.rel (!%p10_p4) target bundleno = 1 (0x1), region = 66 }

</bundles_post_ra>
